<compile_context>
chip_gen: v6e
topology: v6e:2x2x1
jax: 0.10.0
libtpu: 0.0.40
codegen_flags: <defaults>
</compile_context>

<pallas_src>
import functools

import jax
import jax.numpy as jnp
from jax.experimental import pallas as pl
from jax.experimental.pallas import tpu as pltpu

LN_EPS = 1e-5  # nn.LayerNorm default

# Leave headroom vs. the 32 MiB default scoped-VMEM limit (v7x physical VMEM
# is only 64 MiB, so do NOT size tiles against 128 MiB).
_VMEM_BUDGET_BYTES = 24 * 1024 * 1024


def _pick_row_tile(rows, hidden, itemsize, n_buffered_operands, target=1024):
    """Row-tile: big enough to amortize per-step overhead (~0.35us), small
    enough that all double-buffered operands fit the scoped-VMEM budget."""
    per_row = hidden * itemsize * n_buffered_operands * 2  # x2 double buffering
    max_tm = max(8, _VMEM_BUDGET_BYTES // max(per_row, 1))
    tm = min(rows, target, max_tm)
    if tm >= rows:
        return rows
    return max(8, (tm // 8) * 8)  # sublane (8) alignment for partial tilings


def _pick_dim_tile(dim, target, align):
    t = min(dim, target)
    if t >= dim:
        return dim
    return max(align, (t // align) * align)


# ------------------------- counter-based dropout mask -------------------------
def _keep_mask(shape, row0, col0, n_cols, seed, p):
    """keep-prob ~= 1 - p, independent per element, pure int32 VPU ops.

    murmur3 fmix32 of the element's global flat index mixed with the seed.
    TODO(synk): bit-stream differs from torch's RNG; keep-probability and
    inverted scaling match nn.Dropout(train) semantics.
    """
    c1 = jnp.int32(-2048144789)   # 0x85EBCA6B
    c2 = jnp.int32(-1028477387)   # 0xC2B2AE35
    gold = jnp.int32(-1640531527)  # 0x9E3779B9
    r = jax.lax.broadcasted_iota(jnp.int32, shape, 0) + row0
    c = jax.lax.broadcasted_iota(jnp.int32, shape, 1) + col0
    h = r * jnp.int32(n_cols) + c
    h = h ^ ((seed + jnp.int32(1)) * gold)
    h = h ^ jax.lax.shift_right_logical(h, 16)
    h = h * c1
    h = h ^ jax.lax.shift_right_logical(h, 13)
    h = h * c2
    h = h ^ jax.lax.shift_right_logical(h, 16)
    u = h & jnp.int32((1 << 23) - 1)          # 23 uniform bits, non-negative
    thresh = jnp.int32(min(int(round(float(p) * (1 << 23))), (1 << 23) - 1))
    return u >= thresh


# ----------------------------- LayerNorm kernel -----------------------------
def _layernorm_kernel(x_ref, g_ref, b_ref, o_ref):
    x = x_ref[...].astype(jnp.float32)            # single upcast of the tile
    mean = jnp.mean(x, axis=-1, keepdims=True)
    xc = x - mean
    var = jnp.mean(xc * xc, axis=-1, keepdims=True)
    y = xc * jax.lax.rsqrt(var + LN_EPS)
    y = y * g_ref[...].astype(jnp.float32) + b_ref[...].astype(jnp.float32)
    o_ref[...] = y.astype(o_ref.dtype)


def layernorm(x2d, gamma, beta):
    rows, hidden = x2d.shape
    tm = _pick_row_tile(rows, hidden, x2d.dtype.itemsize, n_buffered_operands=2)
    grid = (pl.cdiv(rows, tm),)
    g2d = gamma.reshape(1, hidden)
    b2d = beta.reshape(1, hidden)
    blk = pl.BlockSpec((tm, hidden), lambda i: (i, 0))
    return pl.pallas_call(
        _layernorm_kernel,
        out_shape=jax.ShapeDtypeStruct((rows, hidden), x2d.dtype),
        grid_spec=pltpu.PrefetchScalarGridSpec(
            num_scalar_prefetch=0,
            grid=grid,
            in_specs=[
                blk,
                pl.BlockSpec((1, hidden), lambda i: (0, 0)),
                pl.BlockSpec((1, hidden), lambda i: (0, 0)),
            ],
            out_specs=blk,
        ),
        compiler_params=pltpu.CompilerParams(
            dimension_semantics=("parallel",)),
    )(x2d, g2d, b2d)


# ---------------------- residual (+ dropout) add kernels ----------------------
def _residual_kernel(x_ref, y_ref, o_ref):
    # No f32 upcast: native bf16 VPU path on v6e/v7x, identity cast for f32.
    o_ref[...] = (x_ref[...] + y_ref[...]).astype(o_ref.dtype)


def _residual_dropout_kernel(seed_ref, x_ref, y_ref, o_ref, *, p, tm, n_cols):
    # program_id stays at kernel top level (never inside pl.when bodies).
    row0 = pl.program_id(0) * tm
    seed = seed_ref[0]
    keep = _keep_mask(y_ref.shape, row0, 0, n_cols, seed, p)
    y = y_ref[...]
    scale = jnp.asarray(1.0 / (1.0 - p), dtype=y.dtype)
    dropped = jnp.where(keep, y * scale, jnp.zeros((), y.dtype))
    o_ref[...] = (x_ref[...] + dropped).astype(o_ref.dtype)


def residual_add(x2d, y2d, *, p=0.0, training=False, seed=0):
    rows, hidden = x2d.shape
    tm = _pick_row_tile(rows, hidden, x2d.dtype.itemsize, n_buffered_operands=3)
    grid = (pl.cdiv(rows, tm),)
    cp = pltpu.CompilerParams(dimension_semantics=("parallel",))

    if (not training) or p <= 0.0:
        blk = pl.BlockSpec((tm, hidden), lambda i: (i, 0))
        return pl.pallas_call(
            _residual_kernel,
            out_shape=jax.ShapeDtypeStruct((rows, hidden), x2d.dtype),
            grid_spec=pltpu.PrefetchScalarGridSpec(
                num_scalar_prefetch=0, grid=grid,
                in_specs=[blk, blk], out_specs=blk),
            compiler_params=cp,
            input_output_aliases={0: 0},   # x aliases the output buffer
        )(x2d, y2d)

    if p >= 1.0:
        return x2d  # dropout drops everything -> x + 0

    seed_arr = jnp.array([seed], dtype=jnp.int32)
    blk_p = pl.BlockSpec((tm, hidden), lambda i, s: (i, 0))
    return pl.pallas_call(
        functools.partial(_residual_dropout_kernel,
                          p=float(p), tm=tm, n_cols=hidden),
        out_shape=jax.ShapeDtypeStruct((rows, hidden), x2d.dtype),
        grid_spec=pltpu.PrefetchScalarGridSpec(
            num_scalar_prefetch=1, grid=grid,
            in_specs=[blk_p, blk_p], out_specs=blk_p),
        compiler_params=cp,
        input_output_aliases={1: 0},   # x (arg index 1, after seed) -> output
    )(seed_arr, x2d, y2d)


# -------- fused dense sublayer: out = x + dropout(normed @ W + b) ------------
def _fused_dense_kernel(seed_ref, n_ref, w_ref, bias_ref, x_ref, o_ref, acc_ref,
                        *, apply_dropout, p, tm, tn, n_cols, k_steps):
    # All program_id queries hoisted to the top level of the kernel (NOT inside
    # pl.when bodies); grid extent along K is a static closed-over int.
    i = pl.program_id(0)
    j = pl.program_id(1)
    k = pl.program_id(2)
    row0 = i * tm
    col0 = j * tn
    seed = seed_ref[0] if apply_dropout else None

    @pl.when(k == 0)
    def _():
        acc_ref[...] = jnp.zeros_like(acc_ref)

    acc_ref[...] += jnp.dot(n_ref[...], w_ref[...],
                            preferred_element_type=jnp.float32)

    @pl.when(k == k_steps - 1)
    def _():
        y = acc_ref[...] + bias_ref[...].astype(jnp.float32)
        if apply_dropout:
            keep = _keep_mask(y.shape, row0, col0, n_cols, seed, p)
            y = jnp.where(keep, y * (1.0 / (1.0 - p)), 0.0)
        o_ref[...] = (x_ref[...].astype(jnp.float32) + y).astype(o_ref.dtype)


def fused_dense_residual(x2d, normed2d, w, bias, *, p=0.0, training=False, seed=0):
    rows, hidden = x2d.shape
    k_dim, n_dim = w.shape
    assert normed2d.shape == (rows, k_dim) and n_dim == hidden

    apply_dropout = bool(training) and (0.0 < p < 1.0)
    if bool(training) and p >= 1.0:
        return x2d

    tm = _pick_dim_tile(rows, 256, 8)
    tn = _pick_dim_tile(n_dim, 256, 128)
    tk = _pick_dim_tile(k_dim, 512, 128)
    if k_dim % tk != 0:
        tk = k_dim  # keep K un-tiled if it does not divide (avoid padded-K garbage)
    grid = (pl.cdiv(rows, tm), pl.cdiv(n_dim, tn), pl.cdiv(k_dim, tk))

    seed_arr = jnp.array([seed], dtype=jnp.int32)
    return pl.pallas_call(
        functools.partial(_fused_dense_kernel,
                          apply_dropout=apply_dropout, p=float(p),
                          tm=tm, tn=tn, n_cols=n_dim, k_steps=grid[2]),
        out_shape=jax.ShapeDtypeStruct((rows, hidden), x2d.dtype),
        grid_spec=pltpu.PrefetchScalarGridSpec(
            num_scalar_prefetch=1,
            grid=grid,
            in_specs=[
                pl.BlockSpec((tm, tk), lambda i, j, k, s: (i, k)),  # LN(x)
                pl.BlockSpec((tk, tn), lambda i, j, k, s: (k, j)),  # W
                pl.BlockSpec((1, tn), lambda i, j, k, s: (0, j)),   # bias
                pl.BlockSpec((tm, tn), lambda i, j, k, s: (i, j)),  # residual x
            ],
            out_specs=pl.BlockSpec((tm, tn), lambda i, j, k, s: (i, j)),
            scratch_shapes=[pltpu.VMEM((tm, tn), jnp.float32)],
        ),
        compiler_params=pltpu.CompilerParams(
            dimension_semantics=("parallel", "parallel", "arbitrary")),
        input_output_aliases={4: 0},   # residual x (arg index 4) -> output
    )(seed_arr, normed2d, w, bias.reshape(1, n_dim), x2d)


# ------------------------------ module wrapper -------------------------------
class DenseSublayer:
    """Example sublayer y = t @ W + b. Carrying params lets the module fuse
    matmul + bias + dropout + residual into a single MXU Pallas kernel."""

    def __init__(self, w, b):
        self.w = w
        self.b = b

    def __call__(self, t):
        return jnp.einsum("bsh,hk->bsk", t, self.w,
                          precision=jax.lax.Precision.HIGHEST) + self.b


class SublayerConnectionPallas:
    """x + dropout(sublayer(LayerNorm(x))); LayerNorm params like nn.LayerNorm."""

    def __init__(self, size, dropout):
        self.size = size
        self.p = float(dropout)
        # nn.LayerNorm default init: weight=1, bias=0
        self.gamma = jnp.ones((size,), jnp.float32)
        self.beta = jnp.zeros((size,), jnp.float32)

    def __call__(self, x, sublayer, *, training=False, seed=0):
        b, s, h = x.shape
        assert h == self.size
        x2d = x.reshape(b * s, h)
        normed2d = layernorm(x2d, self.gamma, self.beta)          # Pallas LN
        if isinstance(sublayer, DenseSublayer):
            # Fused: Pallas MXU matmul with bias + dropout + residual epilogue.
            out2d = fused_dense_residual(x2d, normed2d, sublayer.w, sublayer.b,
                                         p=self.p, training=training, seed=seed)
        else:
            # Generic path: arbitrary callable stays plain-JAX glue.
            sub_out = sublayer(normed2d.reshape(b, s, h))
            assert sub_out.shape == (b, s, h)
            out2d = residual_add(x2d, sub_out.reshape(b * s, h),
                                 p=self.p, training=training, seed=seed)
        return out2d.reshape(b, s, h)


# ------------------------ pure-JAX reference (eval) --------------------------
def _ref(x, gamma, beta, sublayer):
    mean = jnp.mean(x, axis=-1, keepdims=True)
    var = jnp.mean((x - mean) ** 2, axis=-1, keepdims=True)
    normed = (x - mean) / jnp.sqrt(var + LN_EPS) * gamma + beta
    return x + sublayer(normed)   # eval-mode dropout == identity


if __name__ == "__main__":
    B, S, H = 2, 8, 128   # lane-dense hidden (multiple of 128)
    key = jax.random.PRNGKey(0)
    kx, kw, kb, kg, kbeta = jax.random.split(key, 5)
    x = jax.random.normal(kx, (B, S, H), jnp.float32)
    W = jax.random.normal(kw, (H, H), jnp.float32) * (1.0 / H ** 0.5)
    bvec = jax.random.normal(kb, (H,), jnp.float32) * 0.3

    mod = SublayerConnectionPallas(size=H, dropout=0.1)
    # Non-trivial affine params so the test actually exercises gamma/beta.
    mod.gamma = 1.0 + 0.1 * jax.random.normal(kg, (H,), jnp.float32)
    mod.beta = 0.1 * jax.random.normal(kbeta, (H,), jnp.float32)

    dense = DenseSublayer(W, bvec)                                   # fused path
    generic = lambda t: jnp.einsum("bsh,hk->bsk", t, W,
                                   precision=jax.lax.Precision.HIGHEST) + bvec

    ref = _ref(x, mod.gamma, mod.beta, generic)

    # ---- eval mode, fused dense path (LN kernel + fused MXU kernel) ----
    fused_eval = jax.jit(lambda t: mod(t, dense, training=False))
    out_fused = jax.block_until_ready(fused_eval(x))
    assert out_fused.shape == (B, S, H)
    # loose tol covers MXU f32 decomposition differences vs HIGHEST-precision einsum
    assert jnp.allclose(out_fused, ref, atol=2e-2, rtol=2e-2), "fused path mismatch"

    # ---- eval mode, generic callable path (LN kernel + residual kernel) ----
    gen_eval = jax.jit(lambda t: mod(t, generic, training=False))
    out_gen = jax.block_until_ready(gen_eval(x))
    assert jnp.allclose(out_gen, ref, atol=2e-4, rtol=2e-4), "generic path mismatch"

    # ---- training mode (dropout active): statistical sanity checks only ----
    for fwd in (jax.jit(lambda t: mod(t, dense, training=True, seed=123)),
                jax.jit(lambda t: mod(t, generic, training=True, seed=123))):
        o = jax.block_until_ready(fwd(x))
        assert o.shape == (B, S, H)
        assert bool(jnp.all(jnp.isfinite(o)))
        drop_frac = float(jnp.mean((o == x).astype(jnp.float32)))  # dropped -> out == x
        assert 0.02 < drop_frac < 0.25, f"dropout rate off: {drop_frac}"

    print("KERNEL_OK")
</pallas_src>

<mosaic_0001>
module attributes {stable_mosaic.version = 11 : i64} {
  func.func @_fused_dense_kernel(%arg0: i32, %arg1: i32, %arg2: i32, %arg3: memref<1xi32, #tpu.memory_space<smem>>, %arg4: memref<16x128xf32, #tpu.memory_space<vmem>>, %arg5: memref<128x128xf32, #tpu.memory_space<vmem>>, %arg6: memref<1x128xf32, #tpu.memory_space<vmem>>, %arg7: memref<16x128xf32, #tpu.memory_space<vmem>>, %arg8: memref<16x128xf32, #tpu.memory_space<vmem>>, %arg9: memref<16x128xf32, #tpu.memory_space<vmem>>) attributes {dimension_semantics = [#tpu.dimension_semantics<parallel>, #tpu.dimension_semantics<parallel>, #tpu.dimension_semantics<arbitrary>], iteration_bounds = array<i64: 1, 1, 1>, scalar_prefetch = 1 : i64, scratch_operands = 1 : i64, tpu.core_type = #tpu.core_type<tc>, window_params = [{transform_indices = @transform_0, window_bounds = array<i64: 16, 128>}, {transform_indices = @transform_1, window_bounds = array<i64: 128, 128>}, {transform_indices = @transform_2, window_bounds = array<i64: 1, 128>}, {transform_indices = @transform_3, window_bounds = array<i64: 16, 128>}, {transform_indices = @transform_4, window_bounds = array<i64: 16, 128>}]} {
    %c0_i32 = arith.constant 0 : i32
    %0 = arith.cmpi eq, %arg2, %c0_i32 : i32
    %1 = arith.extui %0 : i1 to i32
    %c0_i32_0 = arith.constant 0 : i32
    %2 = arith.cmpi ne, %1, %c0_i32_0 : i32
    scf.if %2 {
      %cst_10 = arith.constant 0.000000e+00 : f32
      %12 = vector.broadcast %cst_10 : f32 to vector<16x128xf32>
      %c0_11 = arith.constant 0 : index
      %c0_12 = arith.constant 0 : index
      %13 = vector.load %arg9[%c0_11, %c0_12] : memref<16x128xf32, #tpu.memory_space<vmem>>, vector<16x128xf32>
      tpu.vector_store %arg9[%c0_11, %c0_12], %12 {strides = array<i32>} : memref<16x128xf32, #tpu.memory_space<vmem>>, vector<16x128xf32>,
    } else {
    }
    %c0 = arith.constant 0 : index
    %c0_1 = arith.constant 0 : index
    %3 = vector.load %arg9[%c0, %c0_1] : memref<16x128xf32, #tpu.memory_space<vmem>>, vector<16x128xf32>
    %c0_2 = arith.constant 0 : index
    %c0_3 = arith.constant 0 : index
    %4 = vector.load %arg4[%c0_2, %c0_3] : memref<16x128xf32, #tpu.memory_space<vmem>>, vector<16x128xf32>
    %c0_4 = arith.constant 0 : index
    %c0_5 = arith.constant 0 : index
    %5 = vector.load %arg5[%c0_4, %c0_5] : memref<128x128xf32, #tpu.memory_space<vmem>>, vector<128x128xf32>
    %cst = arith.constant dense<0.000000e+00> : vector<16x128xf32>
    %6 = tpu.matmul %4, %5, %cst {dimension_numbers = #tpu.dot_dimension_numbers<[1], [0], [0], [1], [0, 0, 1, 1], [], []>} : vector<16x128xf32>, vector<128x128xf32>, vector<16x128xf32> -> vector<16x128xf32>
    %7 = arith.addf %3, %6 : vector<16x128xf32>
    %c0_6 = arith.constant 0 : index
    %c0_7 = arith.constant 0 : index
    %8 = vector.load %arg9[%c0_6, %c0_7] : memref<16x128xf32, #tpu.memory_space<vmem>>, vector<16x128xf32>
    tpu.vector_store %arg9[%c0_6, %c0_7], %7 {strides = array<i32>} : memref<16x128xf32, #tpu.memory_space<vmem>>, vector<16x128xf32>,
    %c0_i32_8 = arith.constant 0 : i32
    %9 = arith.cmpi eq, %arg2, %c0_i32_8 : i32
    %10 = arith.extui %9 : i1 to i32
    %c0_i32_9 = arith.constant 0 : i32
    %11 = arith.cmpi ne, %10, %c0_i32_9 : i32
    scf.if %11 {
      %c0_10 = arith.constant 0 : index
      %c0_11 = arith.constant 0 : index
      %12 = vector.load %arg9[%c0_10, %c0_11] : memref<16x128xf32, #tpu.memory_space<vmem>>, vector<16x128xf32>
      %c0_12 = arith.constant 0 : index
      %c0_13 = arith.constant 0 : index
      %13 = vector.load %arg6[%c0_12, %c0_13] : memref<1x128xf32, #tpu.memory_space<vmem>>, vector<1x128xf32>
      %14 = vector.broadcast %13 : vector<1x128xf32> to vector<16x128xf32>
      %15 = arith.addf %12, %14 : vector<16x128xf32>
      %c0_14 = arith.constant 0 : index
      %c0_15 = arith.constant 0 : index
      %16 = vector.load %arg7[%c0_14, %c0_15] : memref<16x128xf32, #tpu.memory_space<vmem>>, vector<16x128xf32>
      %17 = arith.addf %16, %15 : vector<16x128xf32>
      %c0_16 = arith.constant 0 : index
      %c0_17 = arith.constant 0 : index
      %18 = vector.load %arg8[%c0_16, %c0_17] : memref<16x128xf32, #tpu.memory_space<vmem>>, vector<16x128xf32>
      tpu.vector_store %arg8[%c0_16, %c0_17], %17 {strides = array<i32>} : memref<16x128xf32, #tpu.memory_space<vmem>>, vector<16x128xf32>,
    } else {
    }
    return
  }
  func.func @transform_0(%arg0: i32, %arg1: i32, %arg2: i32, %arg3: memref<1xi32, #tpu.memory_space<smem>>) -> (i32, i32) {
    %c0_i32 = arith.constant 0 : i32
    return %arg0, %arg2 : i32, i32
  }
  func.func @transform_1(%arg0: i32, %arg1: i32, %arg2: i32, %arg3: memref<1xi32, #tpu.memory_space<smem>>) -> (i32, i32) {
    %c0_i32 = arith.constant 0 : i32
    return %arg2, %arg1 : i32, i32
  }
  func.func @transform_2(%arg0: i32, %arg1: i32, %arg2: i32, %arg3: memref<1xi32, #tpu.memory_space<smem>>) -> (i32, i32) {
    %c0_i32 = arith.constant 0 : i32
    %c0_i32_0 = arith.constant 0 : i32
    return %c0_i32, %arg1 : i32, i32
  }
  func.func @transform_3(%arg0: i32, %arg1: i32, %arg2: i32, %arg3: memref<1xi32, #tpu.memory_space<smem>>) -> (i32, i32) {
    %c0_i32 = arith.constant 0 : i32
    return %arg0, %arg1 : i32, i32
  }
  func.func @transform_4(%arg0: i32, %arg1: i32, %arg2: i32, %arg3: memref<1xi32, #tpu.memory_space<smem>>) -> (i32, i32) {
    %c0_i32 = arith.constant 0 : i32
    return %arg0, %arg1 : i32, i32
  }
}

module attributes {stable_mosaic.version = 11 : i64} {
  func.func @_layernorm_kernel(%arg0: i32, %arg1: memref<16x128xf32, #tpu.memory_space<vmem>>, %arg2: memref<1x128xf32, #tpu.memory_space<vmem>>, %arg3: memref<1x128xf32, #tpu.memory_space<vmem>>, %arg4: memref<16x128xf32, #tpu.memory_space<vmem>>) attributes {dimension_semantics = [#tpu.dimension_semantics<parallel>], iteration_bounds = array<i64: 1>, scalar_prefetch = 0 : i64, scratch_operands = 0 : i64, tpu.core_type = #tpu.core_type<tc>, window_params = [{transform_indices = @transform_0, window_bounds = array<i64: 16, 128>}, {pipeline_mode = #tpu.pipeline_mode<synchronous>, transform_indices = @transform_1, window_bounds = array<i64: 1, 128>}, {pipeline_mode = #tpu.pipeline_mode<synchronous>, transform_indices = @transform_2, window_bounds = array<i64: 1, 128>}, {transform_indices = @transform_3, window_bounds = array<i64: 16, 128>}]} {
    %c0 = arith.constant 0 : index
    %c0_0 = arith.constant 0 : index
    %0 = vector.load %arg1[%c0, %c0_0] : memref<16x128xf32, #tpu.memory_space<vmem>>, vector<16x128xf32>
    %cst = arith.constant dense<0.000000e+00> : vector<16xf32>
    %1 = vector.multi_reduction <add>, %0, %cst [1] : vector<16x128xf32> to vector<16xf32>
    %2 = vector.shape_cast %1 : vector<16xf32> to vector<16x1xf32>
    %cst_1 = arith.constant 1.280000e+02 : f32
    %3 = vector.broadcast %cst_1 : f32 to vector<16x1xf32>
    %4 = arith.divf %2, %3 : vector<16x1xf32>
    %5 = vector.broadcast %4 : vector<16x1xf32> to vector<16x128xf32>
    %6 = arith.subf %0, %5 : vector<16x128xf32>
    %7 = arith.mulf %6, %6 : vector<16x128xf32>
    %cst_2 = arith.constant dense<0.000000e+00> : vector<16xf32>
    %8 = vector.multi_reduction <add>, %7, %cst_2 [1] : vector<16x128xf32> to vector<16xf32>
    %9 = vector.shape_cast %8 : vector<16xf32> to vector<16x1xf32>
    %cst_3 = arith.constant 1.280000e+02 : f32
    %10 = vector.broadcast %cst_3 : f32 to vector<16x1xf32>
    %11 = arith.divf %9, %10 : vector<16x1xf32>
    %cst_4 = arith.constant 9.99999974E-6 : f32
    %12 = vector.broadcast %cst_4 : f32 to vector<16x1xf32>
    %13 = arith.addf %11, %12 : vector<16x1xf32>
    %14 = math.rsqrt %13 : vector<16x1xf32>
    %15 = vector.broadcast %14 : vector<16x1xf32> to vector<16x128xf32>
    %16 = arith.mulf %6, %15 : vector<16x128xf32>
    %c0_5 = arith.constant 0 : index
    %c0_6 = arith.constant 0 : index
    %17 = vector.load %arg2[%c0_5, %c0_6] : memref<1x128xf32, #tpu.memory_space<vmem>>, vector<1x128xf32>
    %18 = vector.broadcast %17 : vector<1x128xf32> to vector<16x128xf32>
    %19 = arith.mulf %16, %18 : vector<16x128xf32>
    %c0_7 = arith.constant 0 : index
    %c0_8 = arith.constant 0 : index
    %20 = vector.load %arg3[%c0_7, %c0_8] : memref<1x128xf32, #tpu.memory_space<vmem>>, vector<1x128xf32>
    %21 = vector.broadcast %20 : vector<1x128xf32> to vector<16x128xf32>
    %22 = arith.addf %19, %21 : vector<16x128xf32>
    %c0_9 = arith.constant 0 : index
    %c0_10 = arith.constant 0 : index
    %23 = vector.load %arg4[%c0_9, %c0_10] : memref<16x128xf32, #tpu.memory_space<vmem>>, vector<16x128xf32>
    tpu.vector_store %arg4[%c0_9, %c0_10], %22 {strides = array<i32>} : memref<16x128xf32, #tpu.memory_space<vmem>>, vector<16x128xf32>,
    return
  }
  func.func @transform_0(%arg0: i32) -> (i32, i32) {
    %c0_i32 = arith.constant 0 : i32
    %c0_i32_0 = arith.constant 0 : i32
    return %arg0, %c0_i32 : i32, i32
  }
  func.func @transform_1(%arg0: i32) -> (i32, i32) {
    %c0_i32 = arith.constant 0 : i32
    %c0_i32_0 = arith.constant 0 : i32
    %c0_i32_1 = arith.constant 0 : i32
    return %c0_i32, %c0_i32_0 : i32, i32
  }
  func.func @transform_2(%arg0: i32) -> (i32, i32) {
    %c0_i32 = arith.constant 0 : i32
    %c0_i32_0 = arith.constant 0 : i32
    %c0_i32_1 = arith.constant 0 : i32
    return %c0_i32, %c0_i32_0 : i32, i32
  }
  func.func @transform_3(%arg0: i32) -> (i32, i32) {
    %c0_i32 = arith.constant 0 : i32
    %c0_i32_0 = arith.constant 0 : i32
    return %arg0, %c0_i32 : i32, i32
  }
}

</mosaic_0001>

<bundles_post_ra>
// kernel: _lambda_.3
= control target key start
LH: loop header
LB: loop body
LE: loop exit
PB: predicated region body
PF: predicated region fallthrough
CT: control target
= control target key end

     0   :  { %11 = vsyncpa [#allocation6], 0  ;;  %s242_s18 = smov [#allocation5]   ;;  %s299_s0 = inlined_call_operand.<no memory space> [shape: s32[1], index: 0, kind: input, shape index: {}]   ;;  %s300_s1 = inlined_call_operand.vmem [shape: f32[16,128], index: 1, kind: input, shape index: {}]   ;;  %s301_s2 = inlined_call_operand.hbm [shape: f32[128,128], index: 2, kind: input, shape index: {}]   ;;  %s302_s3 = inlined_call_operand.vmem [shape: f32[1,128], index: 3, kind: input, shape index: {}]   ;;  %s303_s4 = inlined_call_operand.vmem [shape: f32[16,128], index: 4, kind: input, shape index: {}, may-alias: {4,5}]   ;;  %s304_s5 = inlined_call_operand.vmem [shape: f32[16,128], index: 5, kind: output, shape index: {}, may-alias: {4,5}]  }
   0x1   :  { %s19_s19 = sshll.u32 %s242_s18, 4  ;;  %s20_s19 = int_to_ptr.vmem [resolvable:$true] %s19_s19 }
   0x2   :  { %s228_s0 = scalar_lea.vmem %s20_s19, 2048  ;;  %p233_p1 = scmp.lt.s32.totalorder %s20_s19, %s20_s19 }
   0x3   :  { %p229_p0 = scmp.ne.s32.totalorder %s20_s19, %s228_s0  ;;  %p234_p2 = scmp.lt.s32.totalorder %s228_s0, %s228_s0 }
   0x5   :  { %p235_p3 = por %p234_p2, %p233_p1 }
   0x7   :  { %p236_p4 = pnand %p235_p3, %p229_p0 }
   0x9   :  { %239 = shalt.err (!%p236_p4)
}
   0xa   :  { %s243_s20 = smov 128   ;;  %s244_s21 = smov 8  }
   0xb   :  { %25 = dma.hbm_to_vmem [thread:$0]  %s301_s2, 2048, %s20_s19, [#allocation6], %s243_s20, %s243_s20, %s244_s21  }
   0xc   :  { %240 = dma.done.wait [#allocation6], 2048  }
   0xd   :  { %241 = vsyncadd [#allocation6], 4294965248  ;;  %v58_v0 = vld [vmem:[#allocation5 + $0x78] sm:$0xff]  ;;  %v57_v1 = vld [vmem:[#allocation5 + $0x70] sm:$0xff] }
   0xe   :  { %182 = vmatprep.subr.mxu0 %v58_v0  ;;  %v56_v2 = vld [vmem:[#allocation5 + $0x68] sm:$0xff]  ;;  %v55_v3 = vld [vmem:[#allocation5 + $0x60] sm:$0xff]  ;;  %v54_v5 = vld [vmem:[#allocation5 + $0x58] sm:$0xff] }
   0xf   :  { %183 = vmatpush3.msra.mxu0 %v58_v0  ;;  %v41_v4 = vld [vmem:[%s300_s1] sm:$0xff]  ;;  %v53_v6 = vld [vmem:[#allocation5 + $0x50] sm:$0xff]  ;;  %v52_v7 = vld [vmem:[#allocation5 + $0x48] sm:$0xff] }
  0x10   :  { %184 = vmatprep.subr.mxu0 %v57_v1  ;;  %214 = vmatprep.mubr.f32.mxu0 %v41_v4  ;;  %v51_v8 = vld [vmem:[#allocation5 + $0x40] sm:$0xff]  ;;  %v50_v9 = vld [vmem:[#allocation5 + $0x38] sm:$0xff]  ;;  %v49_v10 = vld [vmem:[#allocation5 + $0x30] sm:$0xff] }
  0x11   :  { %185 = vmatpush3.msra.mxu0 %v57_v1  ;;  %v48_v11 = vld [vmem:[#allocation5 + $0x28] sm:$0xff]  ;;  %v47_v12 = vld [vmem:[#allocation5 + $0x20] sm:$0xff]  ;;  %v46_v13 = vld [vmem:[#allocation5 + $0x18] sm:$0xff] }
  0x12   :  { %186 = vmatprep.subr.mxu0 %v56_v2  ;;  %v45_v14 = vld [vmem:[#allocation5 + $0x10] sm:$0xff]  ;;  %v44_v15 = vld [vmem:[#allocation5 + $0x8] sm:$0xff]  ;;  %v43_v16 = vld [vmem:[#allocation5] sm:$0xff] }
  0x13   :  { %187 = vmatpush3.msra.mxu0 %v56_v2  ;;  %v42_v17 = vld [vmem:[%s300_s1 + $0x8] sm:$0xff]  ;;  %v163_v18 = vld [vmem:[%s302_s3] ss:$0 sm:$0xff] }
  0x14   :  { %188 = vmatprep.subr.mxu0 %v55_v3  ;;  %v153_v20 = vld [vmem:[%s303_s4 + $0x8] sm:$0xff]  ;;  %v152_v23 = vld [vmem:[%s303_s4] sm:$0xff] }
  0x15   :  { %189 = vmatpush3.msra.mxu0 %v55_v3 }
  0x16   :  { %190 = vmatprep.subr.mxu0 %v54_v5 }
  0x17   :  { %191 = vmatpush3.msra.mxu0 %v54_v5 }
  0x18   :  { %192 = vmatprep.subr.mxu0 %v53_v6 }
  0x19   :  { %193 = vmatpush3.msra.mxu0 %v53_v6 }
  0x1a   :  { %194 = vmatprep.subr.mxu0 %v52_v7 }
  0x1b   :  { %195 = vmatpush3.msra.mxu0 %v52_v7 }
  0x1c   :  { %196 = vmatprep.subr.mxu0 %v51_v8 }
  0x1d   :  { %197 = vmatpush3.msra.mxu0 %v51_v8 }
  0x1e   :  { %198 = vmatprep.subr.mxu0 %v50_v9 }
  0x1f   :  { %199 = vmatpush3.msra.mxu0 %v50_v9 }
  0x20   :  { %200 = vmatprep.subr.mxu0 %v49_v10 }
  0x21   :  { %201 = vmatpush3.msra.mxu0 %v49_v10 }
  0x22   :  { %202 = vmatprep.subr.mxu0 %v48_v11 }
  0x23   :  { %203 = vmatpush3.msra.mxu0 %v48_v11 }
  0x24   :  { %204 = vmatprep.subr.mxu0 %v47_v12 }
  0x25   :  { %205 = vmatpush3.msra.mxu0 %v47_v12 }
  0x26   :  { %206 = vmatprep.subr.mxu0 %v46_v13 }
  0x27   :  { %207 = vmatpush3.msra.mxu0 %v46_v13 }
  0x28   :  { %208 = vmatprep.subr.mxu0 %v45_v14 }
  0x29   :  { %209 = vmatpush3.msra.mxu0 %v45_v14 }
  0x2a   :  { %210 = vmatprep.subr.mxu0 %v44_v15 }
  0x2b   :  { %211 = vmatpush3.msra.mxu0 %v44_v15 }
  0x2c   :  { %212 = vmatprep.subr.mxu0 %v43_v16 }
  0x2d   :  { %213 = vmatpush3.msra.mxu0 %v43_v16 }
  0x2e   :  { %215 = vmatmul.mubr.f32.vlgmr.msra.gmra.mxu0 %v42_v17 }
  0xee   :  { %v216_v19 = vpop.f32.mrf.mxu0 }
  0xef   :  { %v151_v21 = vadd.f32 %v216_v19, %v163_v18 }
  0xf0   :  { %v125_v22 = vpop.f32.mrf.mxu0 }
  0xf1   :  { %v155_v24 = vadd.f32 %v153_v20, %v151_v21  ;;  %v150_v25 = vadd.f32 %v163_v18, %v125_v22 }
  0xf3   :  { %157 = vst [vmem:[%s304_s5 + $0x8] sm:$0xff] %v155_v24  ;;  %v154_v26 = vadd.f32 %v152_v23, %v150_v25 }
  0xf5   :  { %156 = vst [vmem:[%s304_s5] sm:$0xff] %v154_v26 }
  0xf6   :  { %162 = vsyncpa [#allocation6], 1 }

// kernel: _lambda_.2
= control target key start
LH: loop header
LB: loop body
LE: loop exit
PB: predicated region body
PF: predicated region fallthrough
CT: control target
= control target key end

     0   :  { %s107_s0 = inlined_call_operand.vmem [shape: f32[16,128], index: 0, kind: input, shape index: {}]   ;;  %s108_s1 = inlined_call_operand.vmem [shape: f32[1,128], index: 1, kind: input, shape index: {}]   ;;  %s109_s2 = inlined_call_operand.vmem [shape: f32[1,128], index: 2, kind: input, shape index: {}]   ;;  %s110_s3 = inlined_call_operand.vmem [shape: f32[16,128], index: 3, kind: output, shape index: {}]  }
   0x1   :  { %v14_v0 = vld [vmem:[%s107_s0] sm:$0xff]  ;;  %v15_v1 = vld [vmem:[%s107_s0 + $0x8] sm:$0xff] }
   0x2   :  { %16 = vadd.xlane.f32.xlu0 %v14_v0  ;;  %v63_v17 = vld [vmem:[%s108_s1] ss:$0 sm:$0xff] }
   0x3   :  { %v64_v19 = vld [vmem:[%s109_s2] ss:$0 sm:$0xff] }
   0x6   :  { %18 = vadd.xlane.f32.xlu0 %v15_v1 }
  0x8b   :  { %v17_v2 = vpop.xlane.xlu0 %16 }
  0x8c   :  { %v21_v3 = vmul.f32 0.0078125, %v17_v2 }
  0x8e   :  { %v23_v4 = vsub.f32 %v14_v0, %v21_v3 }
  0x8f   :  { %v19_v5 = vpop.xlane.xlu0 %18 }
  0x90   :  { %v22_v6 = vmul.f32 0.0078125, %v19_v5  ;;  %v25_v7 = vmul.f32 %v23_v4, %v23_v4 }
  0x92   :  { %v24_v8 = vsub.f32 %v15_v1, %v22_v6  ;;  %27 = vadd.xlane.f32.xlu1 %v25_v7 }
  0x94   :  { %v26_v9 = vmul.f32 %v24_v8, %v24_v8 }
  0x96   :  { %29 = vadd.xlane.f32.xlu1 %v26_v9 }
 0x11b   :  { %v28_v10 = vpop.xlane.xlu1 %27 }
 0x11c   :  { %v31_v11 = vmul.f32 0.0078125, %v28_v10 }
 0x11e   :  { %v33_v12 = vadd.f32 1e-05, %v31_v11 }
 0x11f   :  { %v30_v13 = vpop.xlane.xlu1 %29 }
 0x120   :  { %65 = vrsqrt.f32 %v33_v12  ;;  %v32_v14 = vmul.f32 0.0078125, %v30_v13 }
 0x122   :  { %v34_v15 = vadd.f32 1e-05, %v32_v14 }
 0x124   :  { %67 = vrsqrt.f32 %v34_v15 }
 0x12d   :  { %v66_v16 = vpop.eup %65 }
 0x12e   :  { %v37_v18 = vmul.f32 %v66_v16, %v23_v4 }
 0x130   :  { %v46_v20 = vmul.f32 %v63_v17, %v37_v18 }
 0x131   :  { %v68_v21 = vpop.eup %67 }
 0x132   :  { %v55_v22 = vadd.f32 %v64_v19, %v46_v20  ;;  %v38_v23 = vmul.f32 %v68_v21, %v24_v8 }
 0x134   :  { %57 = vst [vmem:[%s110_s3] sm:$0xff] %v55_v22  ;;  %v47_v24 = vmul.f32 %v63_v17, %v38_v23 }
 0x136   :  { %v56_v25 = vadd.f32 %v64_v19, %v47_v24 }
 0x138   :  { %58 = vst [vmem:[%s110_s3 + $0x8] sm:$0xff] %v56_v25 }

</bundles_post_ra>
